<compile_context>
chip_gen: v5e
topology: v5e:2x2
jax: 0.10.0
libtpu: 0.0.40
codegen_flags: <defaults>
</compile_context>

<pallas_src>
import functools

import jax
import jax.numpy as jnp
from jax.experimental import pallas as pl
from jax.experimental.pallas import tpu as pltpu
import numpy as np


def _chomp_kernel(x_ref, o_ref):
    # Tiled path: in/out blocks are identical -> the slice is a free
    # full-extent static slice (straight copy).
    # Short-sequence path: x_ref is (rt, L), o_ref is (rt, L_out) -> static
    # leading slice of the time axis.
    o_ref[...] = x_ref[:, : o_ref.shape[-1]]


def _pick_row_tile(n_rows, sublane, row_bytes, time_steps, min_steps=8):
    """Row tile from a VMEM byte budget, shrunk until the grid has several steps.

    row_bytes = bytes contributed per row by one (input block + output block)
    pair; the pair is double-buffered, so budget 4 MiB/pair ~= 8 MiB resident.
    """
    budget = 4 * 1024 * 1024
    rt = (budget // max(row_bytes, 1)) // sublane * sublane
    rt = max(rt, sublane)
    rt = min(rt, n_rows)          # full row extent is always a legal block dim
    # Prefer several grid steps so the pipeline overlaps DMAs (and both v7x
    # TensorCores get work under "parallel" semantics).
    while time_steps * pl.cdiv(n_rows, rt) < min_steps and rt > sublane:
        rt = max(sublane, (rt // 2) // sublane * sublane)
    return rt


@functools.partial(jax.jit, static_argnames=("chomp_size",))
def chomp1d(x, chomp_size):
    """Pallas equivalent of Chomp1d.forward: x[:, :, :-chomp_size].contiguous()."""
    if chomp_size < 0:
        raise ValueError("chomp_size must be non-negative")
    B, C, L = x.shape
    # Exact PyTorch slicing parity: `:-0` and `:-k` with k >= L are empty.
    L_out = L - chomp_size if 0 < chomp_size < L else 0
    if L_out <= 0:
        return x[:, :, :0]

    R = B * C                          # fold batch*channels into the row axis
    x2 = x.reshape(R, L)

    itemsize = jnp.dtype(x.dtype).itemsize
    sublane = max(8, 32 // itemsize)   # dtype-aware sublane packing multiple
    lane = 128

    if L_out >= lane:
        # ---- Tiled path: identical (rt, tl) in/out blocks, 2-D grid. ----
        tl = min(512, (L_out // lane) * lane)      # multiple of 128, <= L_out <= L
        rt = _pick_row_tile(R, sublane, 2 * tl * itemsize,
                            time_steps=pl.cdiv(L_out, tl))
        # If still too few steps, shrink the time tile (never below 128 lanes).
        while pl.cdiv(R, rt) * pl.cdiv(L_out, tl) < 8 and tl > lane:
            tl = max(lane, (tl // 2) // lane * lane)
        grid = (pl.cdiv(R, rt), pl.cdiv(L_out, tl))
        in_specs = [pl.BlockSpec((rt, tl), lambda i, j: (i, j))]
        out_specs = pl.BlockSpec((rt, tl), lambda i, j: (i, j))
        dim_sem = ("parallel", "parallel")
    else:
        # ---- Short-sequence path: full time extents, slice in the kernel. ----
        rt = _pick_row_tile(R, sublane, (L + L_out) * itemsize, time_steps=1)
        grid = (pl.cdiv(R, rt),)
        in_specs = [pl.BlockSpec((rt, L), lambda i: (i, 0))]
        out_specs = pl.BlockSpec((rt, L_out), lambda i: (i, 0))
        dim_sem = ("parallel",)

    out2 = pl.pallas_call(
        _chomp_kernel,
        out_shape=jax.ShapeDtypeStruct((R, L_out), x.dtype),
        grid_spec=pltpu.PrefetchScalarGridSpec(
            num_scalar_prefetch=0,
            grid=grid,
            in_specs=in_specs,
            out_specs=out_specs,
        ),
        compiler_params=pltpu.CompilerParams(dimension_semantics=dim_sem),
    )(x2)

    return out2.reshape(B, C, L_out)


if __name__ == "__main__":
    key = jax.random.PRNGKey(0)

    # Small TCN-style shape (short-sequence path): (batch, channels, length).
    B, C, L = 2, 4, 16
    chomp_size = 2
    x = jax.random.normal(key, (B, C, L), jnp.float32)
    out = jax.block_until_ready(chomp1d(x, chomp_size))
    ref = x[:, :, :-chomp_size]
    np.testing.assert_allclose(np.asarray(out), np.asarray(ref), rtol=0, atol=0)
    assert out.shape == (B, C, L - chomp_size)

    # Moderately larger ragged shape (tiled path): multiple row and time
    # tiles, both with partial last tiles, bf16 to exercise sublane packing.
    B2, C2, L2 = 2, 12, 300
    chomp2 = 3
    x_big = jax.random.normal(jax.random.PRNGKey(0), (B2, C2, L2), jnp.bfloat16)
    out_big = jax.block_until_ready(chomp1d(x_big, chomp2))
    ref_big = x_big[:, :, :-chomp2]
    np.testing.assert_allclose(
        np.asarray(out_big.astype(jnp.float32)),
        np.asarray(ref_big.astype(jnp.float32)),
        rtol=0, atol=0)
    assert out_big.shape == (B2, C2, L2 - chomp2)

    print("KERNEL_OK")
</pallas_src>

<mosaic_0001>
module attributes {stable_mosaic.version = 11 : i64} {
  func.func @_chomp_kernel(%arg0: i32, %arg1: memref<8x16xf32, #tpu.memory_space<vmem>>, %arg2: memref<8x14xf32, #tpu.memory_space<vmem>>) attributes {dimension_semantics = [#tpu.dimension_semantics<parallel>], iteration_bounds = array<i64: 1>, scalar_prefetch = 0 : i64, scratch_operands = 0 : i64, tpu.core_type = #tpu.core_type<tc>, window_params = [{transform_indices = @transform_0, window_bounds = array<i64: 8, 16>}, {transform_indices = @transform_1, window_bounds = array<i64: 8, 14>}]} {
    %c0 = arith.constant 0 : index
    %c0_0 = arith.constant 0 : index
    %0 = vector.load %arg1[%c0, %c0_0] : memref<8x16xf32, #tpu.memory_space<vmem>>, vector<8x14xf32>
    %c0_1 = arith.constant 0 : index
    %c0_2 = arith.constant 0 : index
    %1 = vector.load %arg2[%c0_1, %c0_2] : memref<8x14xf32, #tpu.memory_space<vmem>>, vector<8x14xf32>
    tpu.vector_store %arg2[%c0_1, %c0_2], %0 {strides = array<i32>} : memref<8x14xf32, #tpu.memory_space<vmem>>, vector<8x14xf32>,
    return
  }
  func.func @transform_0(%arg0: i32) -> (i32, i32) {
    %c0_i32 = arith.constant 0 : i32
    %c0_i32_0 = arith.constant 0 : i32
    return %arg0, %c0_i32 : i32, i32
  }
  func.func @transform_1(%arg0: i32) -> (i32, i32) {
    %c0_i32 = arith.constant 0 : i32
    %c0_i32_0 = arith.constant 0 : i32
    return %arg0, %c0_i32 : i32, i32
  }
}

</mosaic_0001>

<bundles_post_ra>
// kernel: chomp1d.1
= control target key start
LH: loop header
LB: loop body
LE: loop exit
PB: predicated region body
PF: predicated region fallthrough
CT: control target
= control target key end

     0   :  { %6 = vsyncpa [#allocation3], 0  ;;  %s115_s0 = inlined_call_operand.hbm [shape: f32[8,16], index: 0, kind: input, shape index: {}]   ;;  %s116_s1 = inlined_call_operand.hbm [shape: f32[8,14], index: 1, kind: output, shape index: {}]  }
   0x1   :  { %7 = vsyncpa [#allocation4], 0  ;;  %s13_s8 = sshll.u32 %s115_s0, 4  ;;  %s97_s9 = smov [#allocation2]   ;;  %s14_s8 = int_to_ptr.hbm [resolvable:$true] %s13_s8 }
   0x2   :  { %s15_s10 = sshll.u32 %s97_s9, 4  ;;  %s16_s10 = int_to_ptr.vmem [resolvable:$true] %s15_s10 }
   0x3   :  { %18 = dma.hbm_to_vmem [thread:$0]  %s14_s8, 128, %s16_s10, [#allocation3]  }
   0x4   :  { %93 = dma.done.wait [#allocation3], 128  }
   0x5   :  { %94 = vsyncadd [#allocation3], 4294967168  ;;  %s98_s11 = smov [#allocation5]   ;;  %s33_s15 = sshll.u32 %s116_s1, 4  ;;  %vm24_vm0 = vcmask 113664   ;;  %v23_v0 = vld [vmem:[#allocation2] sm:$0xff]  ;;  %s34_s15 = int_to_ptr.hbm [resolvable:$true] %s33_s15 }
   0x6   :  { %s31_s12 = sshll.u32 %s98_s11, 4  ;;  %25 = vst.msk [vmem:[#allocation5] sm:$0xff] %vm24_vm0, %v23_v0  ;;  %s32_s12 = int_to_ptr.vmem [resolvable:$true] %s31_s12 }
   0x7   :  { %36 = dma.vmem_to_hbm [thread:$0]  %s32_s12, 128, %s34_s15, [#allocation4]  }
   0x8   :  { %95 = dma.done.wait [#allocation4], 128  }
   0x9   :  { %96 = vsyncadd [#allocation4], 4294967168 }
   0xa   :  { %41 = vsyncpa [#allocation3], 1 }
   0xb   :  { %42 = vsyncpa [#allocation4], 1 }

</bundles_post_ra>
